<compile_context>
chip_gen: v5e
topology: v5e:2x2
jax: 0.10.0
libtpu: 0.0.40
codegen_flags: <defaults>
</compile_context>

<pallas_src>
import jax
import jax.numpy as jnp
from jax import lax
from jax.experimental import pallas as pl
from jax.experimental.pallas import tpu as pltpu

KSIZE = 4
DSTEP = 2
PAD = 1
EPS = 1e-5


def _round_up(a, b):
    return (a + b - 1) // b * b


def basic2d_layer(x, weight, bias, gamma, beta):
    """Conv2d(4,2,1) -> train-mode BatchNorm2d -> ReLU.

    x: (N, Cin, H, W) f32; weight: (Cout, Cin, 4, 4); bias/gamma/beta: (Cout,).
    The conv bias is intentionally unused: bias followed by train-mode BatchNorm is
    algebraically a no-op (it is removed by the batch-mean subtraction).
    """
    del bias
    N, C, H, W = x.shape
    Cout = weight.shape[0]
    Hout = (H + 2 * PAD - KSIZE) // DSTEP + 1
    Wout = (W + 2 * PAD - KSIZE) // DSTEP + 1
    Hc, Wc = Hout + 1, Wout + 1          # half-res grid incl. the +1 halo row/col
    Mj = Hout * Wc                       # per-image lane extent (junk col at j == Wout of each row)
    C4 = 4 * C                           # merged (c, ph, pw) contraction axis
    Cpad = _round_up(Cout, 8)
    Lp = _round_up(Hc * Wc + 1, 128)     # lane pad so every (dh,dw) slice [off, off+Mj) is in range
    count = N * Hout * Wout

    # ---- space-to-depth / phase split of the padded input (~1x input bytes; fused by XLA) ----
    # xs[n, c*4 + ph*2 + pw, hc*Wc + wc] = xpad[n, c, 2*hc + ph, 2*wc + pw]
    xp = jnp.pad(x.astype(jnp.float32), ((0, 0), (0, 0), (PAD, PAD), (PAD, PAD)))
    xp = xp[:, :, :2 * Hc, :2 * Wc]
    xs = xp.reshape(N, C, Hc, 2, Wc, 2).transpose(0, 1, 3, 5, 2, 4)   # (N, C, ph, pw, Hc, Wc)
    xs = xs.reshape(N, C4, Hc * Wc)
    xs = jnp.pad(xs, ((0, 0), (0, 0), (0, Lp - Hc * Wc)))

    # ---- weights regrouped to match: wt[2*dh+dw, co, c*4+ph*2+pw] = weight[co, c, 2*dh+ph, 2*dw+pw]
    wt = weight.astype(jnp.float32).reshape(Cout, C, 2, 2, 2, 2)       # (co, c, dh, ph, dw, pw)
    wt = wt.transpose(2, 4, 0, 1, 3, 5).reshape(4, Cout, C4)           # (2*dh+dw, co, c4)
    wt = jnp.pad(wt, ((0, 0), (0, Cpad - Cout), (0, 0)))               # (4, Cpad, C4)

    # mask of real (non-junk) lane positions within one image tile (only needed for the stats pass)
    lane = jnp.arange(Mj, dtype=jnp.int32)
    mask = ((lane % Wc) < Wout).astype(jnp.float32).reshape(1, Mj)

    def conv_tile(xs_ref, w_ref):
        # 4 dense MXU matmuls over contiguous lane slices -> (Cpad, Mj) f32 conv-output tile.
        acc = None
        for dh in range(2):
            for dw in range(2):
                off = dh * Wc + dw
                xt = xs_ref[0, :, pl.ds(off, Mj)]                      # (C4, Mj), static offset
                t = jnp.dot(w_ref[2 * dh + dw], xt,
                            preferred_element_type=jnp.float32)
                acc = t if acc is None else acc + t
        return acc

    # ---- pass 1: per-image partial per-channel sum / sum-of-squares (parallel grid) ----
    def stats_kernel(xs_ref, w_ref, mask_ref, sum_ref, ssq_ref):
        y = conv_tile(xs_ref, w_ref) * mask_ref[...]                   # zero out junk columns
        sum_ref[0] = jnp.sum(y, axis=1, keepdims=True)
        ssq_ref[0] = jnp.sum(y * y, axis=1, keepdims=True)

    # ---- pass 2: recompute conv tile, folded BN scale/shift + ReLU, write NCHW rows directly ----
    def norm_kernel(xs_ref, w_ref, scale_ref, shift_ref, out_ref):
        y = conv_tile(xs_ref, w_ref)
        z = jnp.maximum(y * scale_ref[...] + shift_ref[...], 0.0)
        for i in range(Hout):                                          # drop the junk column per row
            out_ref[0, :, i, :] = z[:, i * Wc:i * Wc + Wout]

    xs_spec = pl.BlockSpec((1, C4, Lp), lambda n: (n, 0, 0))
    w_spec = pl.BlockSpec((4, Cpad, C4), lambda n: (0, 0, 0))

    # Raise the scoped VMEM limit only when per-image blocks actually need it (double-buffered).
    est_bytes = 2 * (C4 * Lp + Cpad * Hout * Wout) * 4 + 4 * Cpad * C4 * 4 + (1 << 16)
    cp_kwargs = dict(dimension_semantics=("parallel",))
    if est_bytes > 12 * 1024 * 1024:
        cp_kwargs["vmem_limit_bytes"] = int(min(est_bytes * 1.5, 120 * 1024 * 1024))
    cparams = pltpu.CompilerParams(**cp_kwargs)

    sums, ssqs = pl.pallas_call(
        stats_kernel,
        out_shape=(jax.ShapeDtypeStruct((N, Cpad, 1), jnp.float32),
                   jax.ShapeDtypeStruct((N, Cpad, 1), jnp.float32)),
        grid=(N,),
        in_specs=[xs_spec, w_spec, pl.BlockSpec((1, Mj), lambda n: (0, 0))],
        out_specs=(pl.BlockSpec((1, Cpad, 1), lambda n: (n, 0, 0)),
                   pl.BlockSpec((1, Cpad, 1), lambda n: (n, 0, 0))),
        compiler_params=cparams,
    )(xs, wt, mask)

    # ---- fold BN (biased batch var) + affine into per-channel scale/shift (O(Cout) work) ----
    total = jnp.sum(sums[:, :, 0], axis=0)
    total_sq = jnp.sum(ssqs[:, :, 0], axis=0)
    mean = total / jnp.float32(count)
    var = jnp.maximum(total_sq / jnp.float32(count) - mean * mean, 0.0)  # guard cancellation
    inv_std = lax.rsqrt(var + EPS)
    gamma_p = jnp.pad(gamma.astype(jnp.float32), (0, Cpad - Cout))
    beta_p = jnp.pad(beta.astype(jnp.float32), (0, Cpad - Cout))
    scale = (gamma_p * inv_std).reshape(Cpad, 1)
    shift = (beta_p - mean * gamma_p * inv_std).reshape(Cpad, 1)

    out = pl.pallas_call(
        norm_kernel,
        out_shape=jax.ShapeDtypeStruct((N, Cpad, Hout, Wout), jnp.float32),
        grid=(N,),
        in_specs=[xs_spec, w_spec,
                  pl.BlockSpec((Cpad, 1), lambda n: (0, 0)),
                  pl.BlockSpec((Cpad, 1), lambda n: (0, 0))],
        out_specs=pl.BlockSpec((1, Cpad, Hout, Wout), lambda n: (n, 0, 0, 0)),
        compiler_params=cparams,
    )(xs, wt, scale, shift)

    return out if Cpad == Cout else out[:, :Cout]


def _reference(x, weight, bias, gamma, beta):
    y = lax.conv_general_dilated(
        x, weight, (DSTEP, DSTEP), ((PAD, PAD), (PAD, PAD)),
        dimension_numbers=("NCHW", "OIHW", "NCHW"))
    y = y + bias.reshape(1, -1, 1, 1)
    mean = y.mean(axis=(0, 2, 3), keepdims=True)
    var = ((y - mean) ** 2).mean(axis=(0, 2, 3), keepdims=True)
    y_hat = (y - mean) / jnp.sqrt(var + EPS)
    z = gamma.reshape(1, -1, 1, 1) * y_hat + beta.reshape(1, -1, 1, 1)
    return jnp.maximum(z, 0.0)


if __name__ == "__main__":
    key = jax.random.PRNGKey(0)
    k_x, k_w, k_b, k_g, k_be = jax.random.split(key, 5)

    N, CIN, COUT, H, W = 2, 4, 8, 16, 16
    x = jax.random.normal(k_x, (N, CIN, H, W), dtype=jnp.float32)
    weight = 0.1 * jax.random.normal(k_w, (COUT, CIN, KSIZE, KSIZE), dtype=jnp.float32)
    bias = 0.1 * jax.random.normal(k_b, (COUT,), dtype=jnp.float32)
    gamma = 1.0 + 0.1 * jax.random.normal(k_g, (COUT,), dtype=jnp.float32)
    beta = 0.1 * jax.random.normal(k_be, (COUT,), dtype=jnp.float32)

    out = basic2d_layer(x, weight, bias, gamma, beta)
    out = jax.block_until_ready(out)

    ref = _reference(x, weight, bias, gamma, beta)
    assert out.shape == (N, COUT, H // 2, W // 2), out.shape
    assert jnp.max(jnp.abs(out - ref)) < 1e-4

    print("KERNEL_OK")
</pallas_src>

<mosaic_0001>
module attributes {stable_mosaic.version = 11 : i64} {
  func.func @stats_kernel(%arg0: i32, %arg1: memref<1x16x128xf32, #tpu.memory_space<vmem>>, %arg2: memref<4x8x16xf32, #tpu.memory_space<vmem>>, %arg3: memref<1x72xf32, #tpu.memory_space<vmem>>, %arg4: memref<1x8x1xf32, #tpu.memory_space<vmem>>, %arg5: memref<1x8x1xf32, #tpu.memory_space<vmem>>) attributes {dimension_semantics = [#tpu.dimension_semantics<parallel>], iteration_bounds = array<i64: 2>, scalar_prefetch = 0 : i64, scratch_operands = 0 : i64, tpu.core_type = #tpu.core_type<tc>, window_params = [{transform_indices = @transform_0, window_bounds = array<i64: 1, 16, 128>}, {pipeline_mode = #tpu.pipeline_mode<synchronous>, transform_indices = @transform_1, window_bounds = array<i64: 4, 8, 16>}, {pipeline_mode = #tpu.pipeline_mode<synchronous>, transform_indices = @transform_2, window_bounds = array<i64: 1, 72>}, {transform_indices = @transform_3, window_bounds = array<i64: 1, 8, 1>}, {transform_indices = @transform_4, window_bounds = array<i64: 1, 8, 1>}]} {
    %c0 = arith.constant 0 : index
    %c0_0 = arith.constant 0 : index
    %c0_1 = arith.constant 0 : index
    %0 = vector.load %arg1[%c0, %c0_0, %c0_1] : memref<1x16x128xf32, #tpu.memory_space<vmem>>, vector<1x16x72xf32>
    %1 = vector.shape_cast %0 : vector<1x16x72xf32> to vector<16x72xf32>
    %c0_2 = arith.constant 0 : index
    %c0_3 = arith.constant 0 : index
    %c0_4 = arith.constant 0 : index
    %2 = vector.load %arg2[%c0_2, %c0_3, %c0_4] : memref<4x8x16xf32, #tpu.memory_space<vmem>>, vector<1x8x16xf32>
    %3 = vector.shape_cast %2 : vector<1x8x16xf32> to vector<8x16xf32>
    %cst = arith.constant dense<0.000000e+00> : vector<8x72xf32>
    %4 = tpu.matmul %3, %1, %cst {dimension_numbers = #tpu.dot_dimension_numbers<[1], [0], [0], [1], [0, 0, 1, 1], [], []>} : vector<8x16xf32>, vector<16x72xf32>, vector<8x72xf32> -> vector<8x72xf32>
    %c0_5 = arith.constant 0 : index
    %c0_6 = arith.constant 0 : index
    %c1 = arith.constant 1 : index
    %5 = vector.load %arg1[%c0_5, %c0_6, %c1] : memref<1x16x128xf32, #tpu.memory_space<vmem>>, vector<1x16x72xf32>
    %6 = vector.shape_cast %5 : vector<1x16x72xf32> to vector<16x72xf32>
    %c1_7 = arith.constant 1 : index
    %c0_8 = arith.constant 0 : index
    %c0_9 = arith.constant 0 : index
    %7 = vector.load %arg2[%c1_7, %c0_8, %c0_9] : memref<4x8x16xf32, #tpu.memory_space<vmem>>, vector<1x8x16xf32>
    %8 = vector.shape_cast %7 : vector<1x8x16xf32> to vector<8x16xf32>
    %cst_10 = arith.constant dense<0.000000e+00> : vector<8x72xf32>
    %9 = tpu.matmul %8, %6, %cst_10 {dimension_numbers = #tpu.dot_dimension_numbers<[1], [0], [0], [1], [0, 0, 1, 1], [], []>} : vector<8x16xf32>, vector<16x72xf32>, vector<8x72xf32> -> vector<8x72xf32>
    %10 = arith.addf %4, %9 : vector<8x72xf32>
    %c0_11 = arith.constant 0 : index
    %c0_12 = arith.constant 0 : index
    %c9 = arith.constant 9 : index
    %11 = vector.load %arg1[%c0_11, %c0_12, %c9] : memref<1x16x128xf32, #tpu.memory_space<vmem>>, vector<1x16x72xf32>
    %12 = vector.shape_cast %11 : vector<1x16x72xf32> to vector<16x72xf32>
    %c2 = arith.constant 2 : index
    %c0_13 = arith.constant 0 : index
    %c0_14 = arith.constant 0 : index
    %13 = vector.load %arg2[%c2, %c0_13, %c0_14] : memref<4x8x16xf32, #tpu.memory_space<vmem>>, vector<1x8x16xf32>
    %14 = vector.shape_cast %13 : vector<1x8x16xf32> to vector<8x16xf32>
    %cst_15 = arith.constant dense<0.000000e+00> : vector<8x72xf32>
    %15 = tpu.matmul %14, %12, %cst_15 {dimension_numbers = #tpu.dot_dimension_numbers<[1], [0], [0], [1], [0, 0, 1, 1], [], []>} : vector<8x16xf32>, vector<16x72xf32>, vector<8x72xf32> -> vector<8x72xf32>
    %16 = arith.addf %10, %15 : vector<8x72xf32>
    %c0_16 = arith.constant 0 : index
    %c0_17 = arith.constant 0 : index
    %c10 = arith.constant 10 : index
    %17 = vector.load %arg1[%c0_16, %c0_17, %c10] : memref<1x16x128xf32, #tpu.memory_space<vmem>>, vector<1x16x72xf32>
    %18 = vector.shape_cast %17 : vector<1x16x72xf32> to vector<16x72xf32>
    %c3 = arith.constant 3 : index
    %c0_18 = arith.constant 0 : index
    %c0_19 = arith.constant 0 : index
    %19 = vector.load %arg2[%c3, %c0_18, %c0_19] : memref<4x8x16xf32, #tpu.memory_space<vmem>>, vector<1x8x16xf32>
    %20 = vector.shape_cast %19 : vector<1x8x16xf32> to vector<8x16xf32>
    %cst_20 = arith.constant dense<0.000000e+00> : vector<8x72xf32>
    %21 = tpu.matmul %20, %18, %cst_20 {dimension_numbers = #tpu.dot_dimension_numbers<[1], [0], [0], [1], [0, 0, 1, 1], [], []>} : vector<8x16xf32>, vector<16x72xf32>, vector<8x72xf32> -> vector<8x72xf32>
    %22 = arith.addf %16, %21 : vector<8x72xf32>
    %c0_21 = arith.constant 0 : index
    %c0_22 = arith.constant 0 : index
    %23 = vector.load %arg3[%c0_21, %c0_22] : memref<1x72xf32, #tpu.memory_space<vmem>>, vector<1x72xf32>
    %24 = vector.broadcast %23 : vector<1x72xf32> to vector<8x72xf32>
    %25 = arith.mulf %22, %24 : vector<8x72xf32>
    %cst_23 = arith.constant dense<0.000000e+00> : vector<8xf32>
    %26 = vector.multi_reduction <add>, %25, %cst_23 [1] : vector<8x72xf32> to vector<8xf32>
    %27 = vector.shape_cast %26 : vector<8xf32> to vector<8x1xf32>
    %c0_24 = arith.constant 0 : index
    %c0_25 = arith.constant 0 : index
    %c0_26 = arith.constant 0 : index
    %28 = vector.load %arg4[%c0_24, %c0_25, %c0_26] : memref<1x8x1xf32, #tpu.memory_space<vmem>>, vector<1x8x1xf32>
    %29 = vector.shape_cast %28 : vector<1x8x1xf32> to vector<8x1xf32>
    %30 = vector.shape_cast %27 : vector<8x1xf32> to vector<1x8x1xf32>
    tpu.vector_store %arg4[%c0_24, %c0_25, %c0_26], %30 {strides = array<i32>} : memref<1x8x1xf32, #tpu.memory_space<vmem>>, vector<1x8x1xf32>,
    %31 = arith.mulf %25, %25 : vector<8x72xf32>
    %cst_27 = arith.constant dense<0.000000e+00> : vector<8xf32>
    %32 = vector.multi_reduction <add>, %31, %cst_27 [1] : vector<8x72xf32> to vector<8xf32>
    %33 = vector.shape_cast %32 : vector<8xf32> to vector<8x1xf32>
    %c0_28 = arith.constant 0 : index
    %c0_29 = arith.constant 0 : index
    %c0_30 = arith.constant 0 : index
    %34 = vector.load %arg5[%c0_28, %c0_29, %c0_30] : memref<1x8x1xf32, #tpu.memory_space<vmem>>, vector<1x8x1xf32>
    %35 = vector.shape_cast %34 : vector<1x8x1xf32> to vector<8x1xf32>
    %36 = vector.shape_cast %33 : vector<8x1xf32> to vector<1x8x1xf32>
    tpu.vector_store %arg5[%c0_28, %c0_29, %c0_30], %36 {strides = array<i32>} : memref<1x8x1xf32, #tpu.memory_space<vmem>>, vector<1x8x1xf32>,
    return
  }
  func.func @transform_0(%arg0: i32) -> (i32, i32, i32) {
    %c0_i32 = arith.constant 0 : i32
    %c0_i32_0 = arith.constant 0 : i32
    %c0_i32_1 = arith.constant 0 : i32
    return %arg0, %c0_i32, %c0_i32_0 : i32, i32, i32
  }
  func.func @transform_1(%arg0: i32) -> (i32, i32, i32) {
    %c0_i32 = arith.constant 0 : i32
    %c0_i32_0 = arith.constant 0 : i32
    %c0_i32_1 = arith.constant 0 : i32
    %c0_i32_2 = arith.constant 0 : i32
    return %c0_i32, %c0_i32_0, %c0_i32_1 : i32, i32, i32
  }
  func.func @transform_2(%arg0: i32) -> (i32, i32) {
    %c0_i32 = arith.constant 0 : i32
    %c0_i32_0 = arith.constant 0 : i32
    %c0_i32_1 = arith.constant 0 : i32
    return %c0_i32, %c0_i32_0 : i32, i32
  }
  func.func @transform_3(%arg0: i32) -> (i32, i32, i32) {
    %c0_i32 = arith.constant 0 : i32
    %c0_i32_0 = arith.constant 0 : i32
    %c0_i32_1 = arith.constant 0 : i32
    return %arg0, %c0_i32, %c0_i32_0 : i32, i32, i32
  }
  func.func @transform_4(%arg0: i32) -> (i32, i32, i32) {
    %c0_i32 = arith.constant 0 : i32
    %c0_i32_0 = arith.constant 0 : i32
    %c0_i32_1 = arith.constant 0 : i32
    return %arg0, %c0_i32, %c0_i32_0 : i32, i32, i32
  }
}

</mosaic_0001>

<bundles_post_ra>
// kernel: tpu_custom_call.1
= control target key start
LH: loop header
LB: loop body
LE: loop exit
PB: predicated region body
PF: predicated region fallthrough
CT: control target
= control target key end

     0   :  { %10 = vsyncpa [#allocation3], 0  ;;  %s832_s0 = inlined_call_operand.hbm [shape: f32[2,16,128], index: 0, kind: input, shape index: {}]   ;;  %s833_s1 = inlined_call_operand.hbm [shape: f32[4,8,16], index: 1, kind: input, shape index: {}]   ;;  %s834_s2 = inlined_call_operand.vmem [shape: f32[1,72], index: 2, kind: input, shape index: {}]   ;;  %s835_s3 = inlined_call_operand.vmem [shape: f32[2,8,1], index: 3, kind: output, shape index: {0}]   ;;  %s836_s4 = inlined_call_operand.vmem [shape: f32[2,8,1], index: 4, kind: output, shape index: {1}]  }
   0x1   :  { %12 = vsyncpa [#allocation3 + $0x1], 0 }
   0x2   :  { %13 = vsyncpa [#allocation5], 0  ;;  %s713_s15 = smov 0   ;;  %s715_s16 = smov 0  }
   0x3   :  { %s717_s17 = smov 0   ;;  %s719_s18 = smov 0  }
   0x4 LB: > { %s732_s19 = sadd.s32 4294967295, %s680_s18   ;;  %p39_p0 = scmp.ne.s32.totalorder %s672_s16, %s668_s15  ;;  %s680_s18 = sphi %s719_s18, %s843_s18   ;;  %s676_s17 = sphi %s717_s17, %s842_s17   ;;  %s672_s16 = sphi %s715_s16, %s841_s16   ;;  %s668_s15 = sphi %s713_s15, %s840_s15  }
   0x5   : > { %p40_p1 = scmp.eq.s32.totalorder %s732_s19, 0  ;;  %p493_p2 = scmp.ge.s32.totalorder %s680_s18, 1 }
   0x6   : > { %p144_p3 = scmp.lt.s32.totalorder %s680_s18, 3  ;;  %s155_s23 = sshll.u32 %s833_s1, 4  ;;  %s156_s23 = int_to_ptr.hbm [resolvable:$true] %s155_s23 }
   0x7   : > { %p740_p4 = por %p40_p1, %p39_p0  ;;  %s682_s25 = smov [#allocation4]  }
   0x8   : > { %p747_p5 = pnand %p493_p2, %p144_p3  ;;  %s157_s26 = sshll.u32 %s682_s25, 4  ;;  %s158_s26 = int_to_ptr.vmem [resolvable:$true] %s157_s26 }
   0x9   : > { %s756_s27 = sadd.s32 1, %s680_s18   ;;  %s683_s28 = smov 128  }
   0xa   : > { %p517_p6 = pneg %p747_p5  ;;  %s684_s29 = smov 8  }
   0xb   : > { %s23_s30 = ssub.s32 %s680_s18, %s756_s27  ;;  %s26_s5 = sadd.s32 1, %s676_s17 }
   0xc   : > { %p518_p7 = pnand %p517_p6, %p40_p1  ;;  %p24_p8 = scmp.eq.s32.totalorder %s23_s30, 0 }
   0xd   : > { %p33_p9 = scmp.ne.s32.totalorder %s676_s17, %s672_s16  ;;  %p34_p10 = scmp.eq.s32.totalorder %s680_s18, 0 }
   0xe   : > { %520 = dma.hbm_to_vmem [thread:$0]  (!%p518_p7), %s156_s23, 512, %s158_s26, [#allocation5], %s683_s28, %s683_s28, %s684_s29  }
   0xf   : > { %p526_p11 = scmp.lt.s32.totalorder %s680_s18, 2  ;;  %p35_p12 = por %p34_p10, %p33_p9 }
  0x10   : > { %s769_s6 = scalar_select %p24_p8, %s676_s17, %s26_s5  }
  0x11   : > { %s174_s7 = sand.u32 1, %s676_s17   ;;  %s510_s9 = sshll.u32 %s680_s18, 4 }
  0x12   : > { %s496_s8 = sshll.u32 %s174_s7, 4  ;;  %s183_s12 = scalar_lea.hbm %s832_s0, %s510_s9 }
  0x13   : > { %s178_s13 = scalar_lea.vmem [#allocation2], %s496_s8  ;;  %s184_s15 = sshll.u32 %s183_s12, 4  ;;  %s185_s15 = int_to_ptr.hbm [resolvable:$true] %s184_s15 }
  0x14   : > { %s186_s14 = sshll.u32 %s178_s13, 4  ;;  %p776_p13 = pnand %p526_p11, %p35_p12  ;;  %s187_s14 = int_to_ptr.vmem [resolvable:$true] %s186_s14 }
  0x15   : > { %s175_s22 = scalar_lea.sflag [#allocation3], %s174_s7  ;;  %s612_s23 = sshra.s32 %s185_s15, 4  ;;  %s613_s23 = int_to_ptr.hbm [resolvable:$true] %s612_s23 }
  0x16   : > { %s614_s25 = scalar_lea.hbm %s613_s23, 16  ;;  %p616_p2 = pneg %p776_p13 }
  0x17   : > { %p615_p0 = scmp.ne.s32.totalorder %s613_s23, %s614_s25  ;;  %s619_s30 = scalar_lea.hbm %s832_s0, 32 }
  0x18   : > { %p620_p7 = scmp.lt.s32.totalorder %s613_s23, %s832_s0  ;;  %p621_p8 = scmp.lt.s32.totalorder %s619_s30, %s614_s25 }
  0x19   : > { %p617_p3 = pnand %p616_p2, %p615_p0 }
  0x1a   : > { %p622_p9 = por %p621_p8, %p620_p7 }
  0x1b   : > { %p618_p6 = pneg %p617_p3 }
  0x1d   : > { %p623_p10 = pnand %p622_p9, %p618_p6 }
  0x1f   : > { %626 = shalt.err (!%p623_p10)
}
  0x20   : > { %524 = dma.hbm_to_vmem [thread:$0]  (!%p776_p13), %s185_s15, 256, %s187_s14, %s175_s22, %s683_s28, %s683_s28, %s684_s29  }
  0x21   : > { %198 = sbr.rel (%p747_p5) target bundleno = 428 (0x1ac), region = 32  ;;  %s200_s7 = sand.u32 (!%p747_p5), 1, %s672_s16  }
  0x22   : > { %s500_s9 = sshll.u32 (!%p747_p5), %s200_s7, 4  ;;  %s201_s10 = scalar_lea.sflag (!%p747_p5), [#allocation3], %s200_s7 }
  0x23   : > { %s204_s11 = scalar_lea.vmem (!%p747_p5), [#allocation2], %s500_s9 }
  0x26   : > { %659 = dma.done.wait (%p740_p4), %s201_s10, 256  }
  0x27   : > { %661 = vsyncadd (%p740_p4), %s201_s10, 4294967040 }
  0x28   : > { %663 = dma.done.wait (%p40_p1), [#allocation5], 512  }
  0x29   : > { %665 = vsyncadd (%p40_p1), [#allocation5], 4294966784  ;;  %v246_v0 = vld [vmem:[%s204_s11] sm:$0xff]  ;;  %v247_v1 = vld [vmem:[%s204_s11 + $0x8] sm:$0xff]  ;;  %s685_s24 = smov 119   ;;  %s686_s28 = smov 127  }
  0x2a   : > { %v566_v2 = vpack.i.bf16 %v246_v0, %v247_v1  ;;  %300 = vmatpush.msra.mxu1 %v247_v1  ;;  %s687_s29 = smov 118   ;;  %vm259_vm0 = vcmask 130048   ;;  %v248_v3 = vld [vmem:[#allocation4] sm:$0xff]  ;;  %v307_v10 = vld [vmem:[#allocation4 + $0x10] sm:$0xff]  ;;  %v250_v11 = vld [vmem:[#allocation4 + $0x8] sm:$0xff]  ;;  %vm375_vm1 = vcmask 588800  }
  0x2b   : > { %v339_v15 = vld [vmem:[#allocation4 + $0x18] sm:$0xff]  ;;  %v581_v21 = vld [vmem:[%s834_s2] ss:$0 sm:$0xff]  ;;  %p238_p1 = scmp.lt.s32.totalorder %s732_s19, 1  ;;  %vm379_vm2 = vcmask 7168  }
  0x2c   : > { %567 = vrot.lane.b32.xlu0 %v566_v2, %s685_s24  ;;  %577 = vrot.lane.b32.xlu1 %v566_v2, %s686_s28 }
  0x2d   : > { %301 = vmatpush.msra.mxu1 %v246_v0  ;;  %s845_s19 = smov (!%p238_p1, %s732_s19), 1 }
  0x2e   : > { %505 = vmatmul.msk.f32.vlgmr.msra.gmra.mxu1 %vm259_vm0, %v248_v3  ;;  %s502_s13 = sshll.u32 %s845_s19, 3 }
  0x2f   : > { %s241_s21 = scalar_lea.vmem %s835_s3, %s502_s13  ;;  %s245_s25 = scalar_lea.vmem %s836_s4, %s502_s13 }
  0x34   : > { %572 = vrot.lane.b32.xlu0 %v566_v2, %s687_s29 }
  0x9e   : > { %v568_v4 = vpop.permute.xlu0 %567  ;;  %v578_v5 = vpop.permute.xlu1 %577 }
  0x9f   : > { %v569_v6 = vunpack.i.l.bf16 %v568_v4  ;;  %v579_v7 = vunpack.i.l.bf16 %v578_v5  ;;  %v580_v8 = vunpack.i.h.bf16 %v578_v5  ;;  %v570_v9 = vunpack.i.h.bf16 %v568_v4 }
  0xa1   : > { %331 = vmatpush.msra.mxu2 %v569_v6  ;;  %277 = vmatpush.msra.mxu0 %v579_v7 }
  0xa3   : > { %332 = vmatpush.msra.mxu2 %v570_v9  ;;  %278 = vmatpush.msra.mxu0 %v580_v8 }
  0xa4   : > { %506 = vmatmul.msk.f32.vlgmr.msra.gmra.mxu2 %vm259_vm0, %v307_v10  ;;  %504 = vmatmul.msk.f32.vlgmr.msra.gmra.mxu0 %vm259_vm0, %v250_v11 }
  0xa6   : > { %v573_v12 = vpop.permute.xlu0 %572 }
  0xa7   : > { %v574_v13 = vunpack.i.l.bf16 %v573_v12  ;;  %v575_v14 = vunpack.i.h.bf16 %v573_v12 }
  0xa9   : > { %363 = vmatpush.msra.mxu3 %v574_v13 }
  0xab   : > { %364 = vmatpush.msra.mxu3 %v575_v14  ;;  %v303_v17 = vpop.f32.mrf.mxu1 }
  0xac   : > { %507 = vmatmul.msk.f32.vlgmr.msra.gmra.mxu3 %vm259_vm0, %v339_v15 }
 0x121   : > { %v280_v16 = vpop.f32.mrf.mxu0 }
 0x122   : > { %v304_v18 = vadd.f32 %v303_v17, %v280_v16 }
 0x127   : > { %v334_v19 = vpop.f32.mrf.mxu2 }
 0x128   : > { %v337_v20 = vadd.f32 %v334_v19, %v304_v18 }
 0x12f   : > { %v366_v22 = vpop.f32.mrf.mxu3 }
 0x130   : > { %v369_v23 = vadd.f32 %v366_v22, %v337_v20 }
 0x132   : > { %v374_v24 = vmul.f32 %v581_v21, %v369_v23 }
 0x134   : > { %v376_v25 = vsel %vm375_vm1, %v374_v24, 0.0  ;;  %v381_v26 = vmul.f32 %v374_v24, %v374_v24 }
 0x135   : > { %377 = vadd.xlane.f32.xlu1 %v376_v25 }
 0x136   : > { %v382_v27 = vsel %vm375_vm1, %v381_v26, 0.0 }
 0x137   : > { %383 = vadd.xlane.f32.xlu2 %v382_v27 }
 0x1a8   : > { %v378_v28 = vpop.xlane.xlu1 %377 }
 0x1a9   : > { %380 = vst.msk [vmem:[%s241_s21] sm:$0xff] %vm379_vm2, %v378_v28 }
 0x1aa   : > { %v384_v29 = vpop.xlane.xlu2 %383 }
 0x1ab   : > { %385 = vst.msk [vmem:[%s245_s25] sm:$0xff] %vm379_vm2, %v384_v29 }
 0x1ac PF: > { %p16_p4 = scmp.ge.s32.totalorder %s756_s27, 4   ;;  %s840_s15 = smov %s672_s16 }
 0x1ad   : > { %s841_s16 = smov %s676_s17  ;;  %s842_s17 = smov %s769_s6 }
 0x1ae   : > { %s843_s18 = smov %s756_s27  ;;  %18 = sbr.rel (!%p16_p4) target bundleno = 4 (0x4), region = 91 }
 0x1b3   :  { %419 = vsyncpa [#allocation3], 1 }
 0x1b4   :  { %421 = vsyncpa [#allocation3 + $0x1], 1 }
 0x1b5   :  { %422 = vsyncpa [#allocation5], 1 }

</bundles_post_ra>
